<compile_context>
chip_gen: v5e
topology: v5e:2x2
jax: 0.10.0
libtpu: 0.0.40
codegen_flags: <defaults>
</compile_context>

<pallas_src>
import functools

import jax
import jax.numpy as jnp
from jax.experimental import pallas as pl
from jax.experimental.pallas import tpu as pltpu

_LANE = 128
_SUBLANE = 8


def _round_up(n, m):
    return ((n + m - 1) // m) * m


def _vmem_cap_bytes():
    """Per-generation VMEM limit cap: exploit 128 MiB on v5e/v6e, headroom on v7x."""
    try:
        kind = jax.devices()[0].device_kind.lower()
    except Exception:
        return 64 << 20
    if "v5" in kind or "v6" in kind:
        return 100 << 20          # 128 MiB physical; leave room for XLA scratch
    return 56 << 20               # v7x: 64 MiB physical; don't budget to the ceiling


def mlp_kernel(x_ref, w1_ref, b1_ref, w2_ref, b2_ref, o_ref):
    """One batch tile: (x @ W1 + b1) -> relu -> (@ W2 + b2) -> softmax(last axis)."""
    # In-kernel bf16 cast of the streamed f32 x tile (MXU inputs), f32 accumulation.
    x = x_ref[...].astype(jnp.bfloat16)

    # layer_input
    h = jnp.dot(x, w1_ref[...], preferred_element_type=jnp.float32)
    h = h + b1_ref[...]

    # dropout (nn.Dropout(), p=0.5) is identity at inference.
    # TODO(synk): training-mode dropout mask (pltpu.prng_random_bits) not emitted.

    # relu (f32 VPU)
    h = jnp.maximum(h, 0.0)

    # layer_hidden
    logits = jnp.dot(h.astype(jnp.bfloat16), w2_ref[...],
                     preferred_element_type=jnp.float32)
    # Padded class columns carry a -1e30 bias (mask baked into b2 on the host),
    # so exp() on them is exactly 0 -> no in-kernel iota/where needed.
    logits = logits + b2_ref[...]

    # softmax over dim=1 (last axis of the 2-D view). Exact divide so rows sum to 1.
    m = jnp.max(logits, axis=-1, keepdims=True)
    e = jnp.exp(logits - m)
    denom = jnp.sum(e, axis=-1, keepdims=True)
    o_ref[...] = (e / denom).astype(o_ref.dtype)


@functools.partial(jax.jit, static_argnames=("block_batch",))
def mlp_forward(x, w1, b1, w2, b2, *, block_batch=512):
    """x: (B, C, H, W) float32. Returns softmax probabilities (B, dim_out)."""
    B = x.shape[0]
    dim_in = x.shape[1] * x.shape[-2] * x.shape[-1]
    x2d = x.reshape(B, dim_in).astype(jnp.float32)   # glue reshape only, no padded copy

    dim_hidden = w1.shape[1]
    dim_out = w2.shape[1]

    # Lane-dense padded hidden/class dims.
    dh_p = _round_up(dim_hidden, _LANE)
    do_p = _round_up(dim_out, _LANE)

    # Batch tile: multiple of 8 sublanes; ragged last tile handled by the pipeline.
    tb = _round_up(min(block_batch, _round_up(B, _SUBLANE)), _SUBLANE)
    if pl.cdiv(B, tb) == 1 and B >= 2 * _SUBLANE:
        # Give the grid >=2 steps so dimension_semantics=("parallel",) can feed
        # both TensorCores on v7x.
        tb = _round_up(pl.cdiv(B, 2), _SUBLANE)
    num_tiles = pl.cdiv(B, tb)

    # Zero padding is exact: padded hidden cols have zero weight+bias -> relu(0)=0,
    # padded w2 rows are zero -> real logits unchanged; padded class columns get a
    # -1e30 bias so their softmax contribution is exactly zero.
    w1_p = jnp.zeros((dim_in, dh_p), jnp.bfloat16).at[:, :dim_hidden].set(
        w1.astype(jnp.bfloat16))
    b1_p = jnp.zeros((1, dh_p), jnp.float32).at[:, :dim_hidden].set(
        b1.reshape(1, dim_hidden).astype(jnp.float32))
    w2_p = jnp.zeros((dh_p, do_p), jnp.bfloat16).at[:dim_hidden, :dim_out].set(
        w2.astype(jnp.bfloat16))
    b2_p = jnp.full((1, do_p), -1e30, jnp.float32).at[:, :dim_out].set(
        b2.reshape(1, dim_out).astype(jnp.float32))

    # VMEM budget: 2x (double-buffered) x/out tiles + 1x resident weights/biases
    # + f32 intermediates + headroom; clamp to the per-generation cap.
    x_blk = tb * dim_in * 4
    out_blk = tb * do_p * 4
    weights = dim_in * dh_p * 2 + dh_p * 4 + dh_p * do_p * 2 + do_p * 4
    interm = tb * dh_p * 4 + 2 * tb * do_p * 4
    need = 2 * (x_blk + out_blk) + weights + interm + (8 << 20)
    vmem_limit = int(min(max(need, 32 << 20), _vmem_cap_bytes()))

    cost = pl.CostEstimate(
        flops=2 * B * dim_in * dh_p + 2 * B * dh_p * do_p,
        transcendentals=B * do_p,
        bytes_accessed=(B * dim_in * 4 + B * do_p * 4
                        + dim_in * dh_p * 2 + dh_p * do_p * 2
                        + dh_p * 4 + do_p * 4),
    )

    def call(single_buffer_weights):
        def const_spec(shape):
            # Constant index_map -> weights DMA'd once and stay VMEM-resident;
            # single-buffer them so only x/out tiles pay for double buffering.
            if single_buffer_weights:
                return pl.BlockSpec(shape, lambda i: (0, 0),
                                    pipeline_mode=pl.Buffered(buffer_count=1))
            return pl.BlockSpec(shape, lambda i: (0, 0))

        return pl.pallas_call(
            mlp_kernel,
            out_shape=jax.ShapeDtypeStruct((B, do_p), jnp.float32),
            grid=(num_tiles,),
            in_specs=[
                pl.BlockSpec((tb, dim_in), lambda i: (i, 0)),   # x (streamed, f32)
                const_spec((dim_in, dh_p)),                     # w1 (resident)
                const_spec((1, dh_p)),                          # b1 (resident)
                const_spec((dh_p, do_p)),                       # w2 (resident)
                const_spec((1, do_p)),                          # b2 (resident)
            ],
            out_specs=pl.BlockSpec((tb, do_p), lambda i: (i, 0)),
            compiler_params=pltpu.CompilerParams(
                dimension_semantics=("parallel",),
                vmem_limit_bytes=vmem_limit,
            ),
            cost_estimate=cost,
        )(x2d, w1_p, b1_p, w2_p, b2_p)

    use_single = hasattr(pl, "Buffered")
    try:
        out_p = call(use_single)
    except Exception:
        out_p = call(False)   # fall back to default double-buffering

    return out_p[:, :dim_out]


def init_params(key, dim_in, dim_hidden, dim_out):
    """Deterministic init matching nn.Linear's default U(-1/sqrt(fan_in), +)."""
    k1, k2, k3, k4 = jax.random.split(key, 4)
    bound1 = 1.0 / jnp.sqrt(dim_in)
    bound2 = 1.0 / jnp.sqrt(dim_hidden)
    # stored as (in, out): x @ W == torch's x @ W_t.T
    w1 = jax.random.uniform(k1, (dim_in, dim_hidden), jnp.float32,
                            -bound1, bound1)
    b1 = jax.random.uniform(k2, (1, dim_hidden), jnp.float32, -bound1, bound1)
    w2 = jax.random.uniform(k3, (dim_hidden, dim_out), jnp.float32,
                            -bound2, bound2)
    b2 = jax.random.uniform(k4, (1, dim_out), jnp.float32, -bound2, bound2)
    return w1, b1, w2, b2


if __name__ == "__main__":
    # Small shapes consistent with the module's forward (NCHW input).
    B, C, H, W = 2, 4, 16, 16
    dim_in = C * H * W          # 1024
    dim_hidden = 32
    dim_out = 10

    key = jax.random.PRNGKey(0)
    kx, kp = jax.random.split(key)
    x = jax.random.normal(kx, (B, C, H, W), jnp.float32)
    w1, b1, w2, b2 = init_params(kp, dim_in, dim_hidden, dim_out)

    out = mlp_forward(x, w1, b1, w2, b2)
    out = jax.block_until_ready(out)

    # Plain-JAX f32 reference (eval-mode dropout == identity).
    x2d = x.reshape(B, dim_in)
    ref = jax.nn.softmax(jnp.maximum(x2d @ w1 + b1, 0.0) @ w2 + b2, axis=-1)

    assert out.shape == (B, dim_out)
    row_sums = jnp.sum(out, axis=1)
    assert bool(jnp.all(jnp.abs(row_sums - 1.0) < 1e-3))
    assert bool(jnp.max(jnp.abs(out - ref)) < 5e-2)   # bf16-matmul tolerance

    print("KERNEL_OK")
</pallas_src>

<mosaic_0001>
module attributes {stable_mosaic.version = 11 : i64} {
  func.func @mlp_kernel(%arg0: i32, %arg1: memref<8x1024xf32, #tpu.memory_space<vmem>>, %arg2: memref<1024x128xbf16, #tpu.memory_space<vmem>>, %arg3: memref<1x128xf32, #tpu.memory_space<vmem>>, %arg4: memref<128x128xbf16, #tpu.memory_space<vmem>>, %arg5: memref<1x128xf32, #tpu.memory_space<vmem>>, %arg6: memref<8x128xf32, #tpu.memory_space<vmem>>) attributes {dimension_semantics = [#tpu.dimension_semantics<parallel>], iteration_bounds = array<i64: 1>, scalar_prefetch = 0 : i64, scratch_operands = 0 : i64, tpu.core_type = #tpu.core_type<tc>, window_params = [{transform_indices = @transform_0, window_bounds = array<i64: 8, 1024>}, {pipeline_mode = #tpu.pipeline_mode<synchronous>, transform_indices = @transform_1, window_bounds = array<i64: 1024, 128>}, {pipeline_mode = #tpu.pipeline_mode<synchronous>, transform_indices = @transform_2, window_bounds = array<i64: 1, 128>}, {pipeline_mode = #tpu.pipeline_mode<synchronous>, transform_indices = @transform_3, window_bounds = array<i64: 128, 128>}, {pipeline_mode = #tpu.pipeline_mode<synchronous>, transform_indices = @transform_4, window_bounds = array<i64: 1, 128>}, {transform_indices = @transform_5, window_bounds = array<i64: 8, 128>}]} {
    %c0 = arith.constant 0 : index
    %c0_0 = arith.constant 0 : index
    %0 = vector.load %arg1[%c0, %c0_0] : memref<8x1024xf32, #tpu.memory_space<vmem>>, vector<8x1024xf32>
    %1 = arith.truncf %0 : vector<8x1024xf32> to vector<8x1024xbf16>
    %c0_1 = arith.constant 0 : index
    %c0_2 = arith.constant 0 : index
    %2 = vector.load %arg2[%c0_1, %c0_2] : memref<1024x128xbf16, #tpu.memory_space<vmem>>, vector<1024x128xbf16>
    %cst = arith.constant dense<0.000000e+00> : vector<8x128xf32>
    %3 = tpu.matmul %1, %2, %cst {dimension_numbers = #tpu.dot_dimension_numbers<[1], [0], [0], [1], [0, 0, 1, 1], [], []>} : vector<8x1024xbf16>, vector<1024x128xbf16>, vector<8x128xf32> -> vector<8x128xf32>
    %c0_3 = arith.constant 0 : index
    %c0_4 = arith.constant 0 : index
    %4 = vector.load %arg3[%c0_3, %c0_4] : memref<1x128xf32, #tpu.memory_space<vmem>>, vector<1x128xf32>
    %5 = vector.broadcast %4 : vector<1x128xf32> to vector<8x128xf32>
    %6 = arith.addf %3, %5 : vector<8x128xf32>
    %cst_5 = arith.constant 0.000000e+00 : f32
    %7 = vector.broadcast %cst_5 : f32 to vector<8x128xf32>
    %8 = arith.maximumf %6, %7 : vector<8x128xf32>
    %9 = arith.truncf %8 : vector<8x128xf32> to vector<8x128xbf16>
    %c0_6 = arith.constant 0 : index
    %c0_7 = arith.constant 0 : index
    %10 = vector.load %arg4[%c0_6, %c0_7] : memref<128x128xbf16, #tpu.memory_space<vmem>>, vector<128x128xbf16>
    %cst_8 = arith.constant dense<0.000000e+00> : vector<8x128xf32>
    %11 = tpu.matmul %9, %10, %cst_8 {dimension_numbers = #tpu.dot_dimension_numbers<[1], [0], [0], [1], [0, 0, 1, 1], [], []>} : vector<8x128xbf16>, vector<128x128xbf16>, vector<8x128xf32> -> vector<8x128xf32>
    %c0_9 = arith.constant 0 : index
    %c0_10 = arith.constant 0 : index
    %12 = vector.load %arg5[%c0_9, %c0_10] : memref<1x128xf32, #tpu.memory_space<vmem>>, vector<1x128xf32>
    %13 = vector.broadcast %12 : vector<1x128xf32> to vector<8x128xf32>
    %14 = arith.addf %11, %13 : vector<8x128xf32>
    %cst_11 = arith.constant dense<0xFF800000> : vector<8xf32>
    %15 = vector.multi_reduction <maximumf>, %14, %cst_11 [1] : vector<8x128xf32> to vector<8xf32>
    %16 = vector.shape_cast %15 : vector<8xf32> to vector<8x1xf32>
    %17 = vector.broadcast %16 : vector<8x1xf32> to vector<8x128xf32>
    %18 = arith.subf %14, %17 : vector<8x128xf32>
    %19 = math.exp %18 : vector<8x128xf32>
    %cst_12 = arith.constant dense<0.000000e+00> : vector<8xf32>
    %20 = vector.multi_reduction <add>, %19, %cst_12 [1] : vector<8x128xf32> to vector<8xf32>
    %21 = vector.shape_cast %20 : vector<8xf32> to vector<8x1xf32>
    %22 = vector.broadcast %21 : vector<8x1xf32> to vector<8x128xf32>
    %23 = arith.divf %19, %22 : vector<8x128xf32>
    %c0_13 = arith.constant 0 : index
    %c0_14 = arith.constant 0 : index
    %24 = vector.load %arg6[%c0_13, %c0_14] : memref<8x128xf32, #tpu.memory_space<vmem>>, vector<8x128xf32>
    tpu.vector_store %arg6[%c0_13, %c0_14], %23 {strides = array<i32>} : memref<8x128xf32, #tpu.memory_space<vmem>>, vector<8x128xf32>,
    return
  }
  func.func @transform_0(%arg0: i32) -> (i32, i32) {
    %c0_i32 = arith.constant 0 : i32
    %c0_i32_0 = arith.constant 0 : i32
    return %arg0, %c0_i32 : i32, i32
  }
  func.func @transform_1(%arg0: i32) -> (i32, i32) {
    %c0_i32 = arith.constant 0 : i32
    %c0_i32_0 = arith.constant 0 : i32
    %c0_i32_1 = arith.constant 0 : i32
    return %c0_i32, %c0_i32_0 : i32, i32
  }
  func.func @transform_2(%arg0: i32) -> (i32, i32) {
    %c0_i32 = arith.constant 0 : i32
    %c0_i32_0 = arith.constant 0 : i32
    %c0_i32_1 = arith.constant 0 : i32
    return %c0_i32, %c0_i32_0 : i32, i32
  }
  func.func @transform_3(%arg0: i32) -> (i32, i32) {
    %c0_i32 = arith.constant 0 : i32
    %c0_i32_0 = arith.constant 0 : i32
    %c0_i32_1 = arith.constant 0 : i32
    return %c0_i32, %c0_i32_0 : i32, i32
  }
  func.func @transform_4(%arg0: i32) -> (i32, i32) {
    %c0_i32 = arith.constant 0 : i32
    %c0_i32_0 = arith.constant 0 : i32
    %c0_i32_1 = arith.constant 0 : i32
    return %c0_i32, %c0_i32_0 : i32, i32
  }
  func.func @transform_5(%arg0: i32) -> (i32, i32) {
    %c0_i32 = arith.constant 0 : i32
    %c0_i32_0 = arith.constant 0 : i32
    return %arg0, %c0_i32 : i32, i32
  }
}

</mosaic_0001>

<bundles_post_ra>
// kernel: mlp_forward.1
= control target key start
LH: loop header
LB: loop body
LE: loop exit
PB: predicated region body
PF: predicated region fallthrough
CT: control target
= control target key end

     0   :  { %10 = vsyncpa [#allocation3], 0  ;;  %s1497_s0 = inlined_call_operand.vmem [shape: f32[2,1024], index: 0, kind: input, shape index: {}]   ;;  %s1498_s1 = inlined_call_operand.vmem [shape: bf16[1024,128], index: 1, kind: input, shape index: {}]   ;;  %s1499_s2 = inlined_call_operand.vmem [shape: f32[1,128], index: 2, kind: input, shape index: {}]   ;;  %s1500_s3 = inlined_call_operand.vmem [shape: bf16[128,128], index: 3, kind: input, shape index: {}]   ;;  %s1501_s4 = inlined_call_operand.vmem [shape: f32[1,128], index: 4, kind: input, shape index: {}]   ;;  %s1502_s5 = inlined_call_operand.hbm [shape: f32[2,128], index: 5, kind: output, shape index: {}]  }
   0x1   :  { %v1115_v0 = vld [vmem:[%s1498_s1 + $0x38] sm:$0xff]  ;;  %v1114_v4 = vld [vmem:[%s1498_s1 + $0x30] sm:$0xff]  ;;  %v1113_v8 = vld [vmem:[%s1498_s1 + $0x28] sm:$0xff] }
   0x2   :  { %v1123_v1 = vld [vmem:[%s1498_s1 + $0x78] sm:$0xff]  ;;  %592 = vmatpush.bf16.msra.mxu0 %v1115_v0  ;;  %v1122_v5 = vld [vmem:[%s1498_s1 + $0x70] sm:$0xff]  ;;  %v1121_v9 = vld [vmem:[%s1498_s1 + $0x68] sm:$0xff] }
   0x3   :  { %v1131_v2 = vld [vmem:[%s1498_s1 + $0xb8] sm:$0xff]  ;;  %605 = vmatpush.bf16.msra.mxu1 %v1123_v1  ;;  %v1130_v6 = vld [vmem:[%s1498_s1 + $0xb0] sm:$0xff]  ;;  %v1129_v10 = vld [vmem:[%s1498_s1 + $0xa8] sm:$0xff] }
   0x4   :  { %v1139_v3 = vld [vmem:[%s1498_s1 + $0xf8] sm:$0xff]  ;;  %618 = vmatpush.bf16.msra.mxu2 %v1131_v2  ;;  %v1138_v7 = vld [vmem:[%s1498_s1 + $0xf0] sm:$0xff]  ;;  %v1137_v11 = vld [vmem:[%s1498_s1 + $0xe8] sm:$0xff] }
   0x5   :  { %631 = vmatpush.bf16.msra.mxu3 %v1139_v3  ;;  %v1112_v12 = vld [vmem:[%s1498_s1 + $0x20] sm:$0xff]  ;;  %v1111_v16 = vld [vmem:[%s1498_s1 + $0x18] sm:$0xff]  ;;  %v23_v19 = vld [vmem:[%s1497_s0 + $0x10] sm:$0xff] }
   0x6   :  { %593 = vmatpush.bf16.msra.mxu0 %v1114_v4  ;;  %v1120_v13 = vld [vmem:[%s1498_s1 + $0x60] sm:$0xff]  ;;  %v1119_v17 = vld [vmem:[%s1498_s1 + $0x58] sm:$0xff]  ;;  %v27_v21 = vld [vmem:[%s1497_s0 + $0x30] sm:$0xff]  ;;  %39 = vst [vmem:[#allocation1 + $0x1] ss:$4 sm:$0xff] %v23_v19 }
   0x7   :  { %606 = vmatpush.bf16.msra.mxu1 %v1122_v5  ;;  %v1128_v14 = vld [vmem:[%s1498_s1 + $0xa0] sm:$0xff]  ;;  %v1127_v22 = vld [vmem:[%s1498_s1 + $0x98] sm:$0xff]  ;;  %43 = vst [vmem:[#allocation1 + $0x3] ss:$4 sm:$0xff] %v27_v21  ;;  %v1110_v24 = vld [vmem:[%s1498_s1 + $0x10] sm:$0xff] }
   0x8   :  { %619 = vmatpush.bf16.msra.mxu2 %v1130_v6  ;;  %v1136_v15 = vld [vmem:[%s1498_s1 + $0xe0] sm:$0xff]  ;;  %v1135_v23 = vld [vmem:[%s1498_s1 + $0xd8] sm:$0xff]  ;;  %v1118_v25 = vld [vmem:[%s1498_s1 + $0x50] sm:$0xff] }
   0x9   :  { %632 = vmatpush.bf16.msra.mxu3 %v1138_v7  ;;  %v21_v18 = vld [vmem:[%s1497_s0] sm:$0xff]  ;;  %v1126_v26 = vld [vmem:[%s1498_s1 + $0x90] sm:$0xff]  ;;  %v22_v28 = vld [vmem:[%s1497_s0 + $0x8] sm:$0xff] }
   0xa   :  { %594 = vmatpush.bf16.msra.mxu0 %v1113_v8  ;;  %v25_v20 = vld [vmem:[%s1497_s0 + $0x20] sm:$0xff]  ;;  %37 = vst [vmem:[#allocation1] ss:$4 sm:$0xff] %v21_v18  ;;  %v1134_v27 = vld [vmem:[%s1498_s1 + $0xd0] sm:$0xff]  ;;  %v24_v29 = vld [vmem:[%s1497_s0 + $0x18] sm:$0xff] }
   0xb   :  { %607 = vmatpush.bf16.msra.mxu1 %v1121_v9  ;;  %41 = vst [vmem:[#allocation1 + $0x2] ss:$4 sm:$0xff] %v25_v20  ;;  %v1109_v30 = vld [vmem:[%s1498_s1 + $0x8] sm:$0xff]  ;;  %v1108_v35 = vld [vmem:[%s1498_s1] sm:$0xff]  ;;  %v28_v36 = vld [vmem:[%s1497_s0 + $0x38] sm:$0xff] }
   0xc   :  { %620 = vmatpush.bf16.msra.mxu2 %v1129_v10  ;;  %v1117_v31 = vld [vmem:[%s1498_s1 + $0x48] sm:$0xff]  ;;  %45 = vst [vmem:[#allocation1 + $0x20] ss:$4 sm:$0xff] %v22_v28  ;;  %v1116_v37 = vld [vmem:[%s1498_s1 + $0x40] sm:$0xff]  ;;  %v1147_v40 = vld [vmem:[%s1498_s1 + $0x138] sm:$0xff] }
   0xd   :  { %633 = vmatpush.bf16.msra.mxu3 %v1137_v11  ;;  %v1125_v32 = vld [vmem:[%s1498_s1 + $0x88] sm:$0xff]  ;;  %47 = vst [vmem:[#allocation1 + $0x21] ss:$4 sm:$0xff] %v24_v29  ;;  %v1124_v38 = vld [vmem:[%s1498_s1 + $0x80] sm:$0xff]  ;;  %v1155_v42 = vld [vmem:[%s1498_s1 + $0x178] sm:$0xff] }
   0xe   :  { %595 = vmatpush.bf16.msra.mxu0 %v1112_v12  ;;  %v1133_v33 = vld [vmem:[%s1498_s1 + $0xc8] sm:$0xff]  ;;  %v1132_v39 = vld [vmem:[%s1498_s1 + $0xc0] sm:$0xff]  ;;  %51 = vst [vmem:[#allocation1 + $0x23] ss:$4 sm:$0xff] %v28_v36  ;;  %v1163_v46 = vld [vmem:[%s1498_s1 + $0x1b8] sm:$0xff] }
   0xf   :  { %608 = vmatpush.bf16.msra.mxu1 %v1120_v13  ;;  %v26_v34 = vld [vmem:[%s1497_s0 + $0x28] sm:$0xff]  ;;  %v1171_v47 = vld [vmem:[%s1498_s1 + $0x1f8] sm:$0xff]  ;;  %v1146_v52 = vld [vmem:[%s1498_s1 + $0x130] sm:$0xff] }
  0x10   :  { %621 = vmatpush.bf16.msra.mxu2 %v1128_v14  ;;  %49 = vst [vmem:[#allocation1 + $0x22] ss:$4 sm:$0xff] %v26_v34  ;;  %v1154_v53 = vld [vmem:[%s1498_s1 + $0x170] sm:$0xff]  ;;  %v1145_v56 = vld [vmem:[%s1498_s1 + $0x128] sm:$0xff]  ;;  %v1144_v60 = vld [vmem:[%s1498_s1 + $0x120] sm:$0xff] }
  0x11   :  { %634 = vmatpush.bf16.msra.mxu3 %v1136_v15  ;;  %v1162_v54 = vld [vmem:[%s1498_s1 + $0x1b0] sm:$0xff]  ;;  %v1153_v57 = vld [vmem:[%s1498_s1 + $0x168] sm:$0xff]  ;;  %v1152_v61 = vld [vmem:[%s1498_s1 + $0x160] sm:$0xff] }
  0x12   :  { %596 = vmatpush.bf16.msra.mxu0 %v1111_v16  ;;  %v54_v41 = vld.sshfl [vmem:[#allocation1 + $0x10] sm:$0xff pattern:$0x73625140]  ;;  %v52_v43 = vld.sshfl [vmem:[#allocation1] sm:$0xff pattern:$0x73625140] }
  0x13   :  { %609 = vmatpush.bf16.msra.mxu1 %v1119_v17  ;;  %v55_v44 = vld.sshfl [vmem:[#allocation1 + $0x18] sm:$0xff pattern:$0x73625140]  ;;  %v53_v45 = vld.sshfl [vmem:[#allocation1 + $0x8] sm:$0xff pattern:$0x73625140]  ;;  %v70_v48 = vpack.c.bf16 %v54_v41, %v54_v41  ;;  %v68_v49 = vpack.c.bf16 %v52_v43, %v52_v43 }
  0x14   :  { %622 = vmatpush.bf16.msra.mxu2 %v1127_v22  ;;  %v71_v50 = vpack.c.bf16 %v55_v44, %v55_v44  ;;  %v69_v51 = vpack.c.bf16 %v53_v45, %v53_v45  ;;  %v1170_v55 = vld [vmem:[%s1498_s1 + $0x1f0] sm:$0xff]  ;;  %v1161_v58 = vld [vmem:[%s1498_s1 + $0x1a8] sm:$0xff]  ;;  %v1160_v62 = vld [vmem:[%s1498_s1 + $0x1a0] sm:$0xff] }
  0x15   :  { %635 = vmatpush.bf16.msra.mxu3 %v1135_v23  ;;  %v1169_v59 = vld [vmem:[%s1498_s1 + $0x1e8] sm:$0xff]  ;;  %v1168_v63 = vld [vmem:[%s1498_s1 + $0x1e0] sm:$0xff]  ;;  %v1143_v0 = vld [vmem:[%s1498_s1 + $0x118] sm:$0xff] }
  0x16   :  { %597 = vmatpush.bf16.msra.mxu0 %v1110_v24  ;;  %v1151_v1 = vld [vmem:[%s1498_s1 + $0x158] sm:$0xff]  ;;  %v1142_v4 = vld [vmem:[%s1498_s1 + $0x110] sm:$0xff]  ;;  %v1141_v8 = vld [vmem:[%s1498_s1 + $0x108] sm:$0xff] }
  0x17   :  { %610 = vmatpush.bf16.msra.mxu1 %v1118_v25  ;;  %v1159_v2 = vld [vmem:[%s1498_s1 + $0x198] sm:$0xff]  ;;  %v1150_v5 = vld [vmem:[%s1498_s1 + $0x150] sm:$0xff]  ;;  %v1149_v9 = vld [vmem:[%s1498_s1 + $0x148] sm:$0xff] }
  0x18   :  { %623 = vmatpush.bf16.msra.mxu2 %v1126_v26  ;;  %v1167_v3 = vld [vmem:[%s1498_s1 + $0x1d8] sm:$0xff]  ;;  %v1158_v6 = vld [vmem:[%s1498_s1 + $0x190] sm:$0xff]  ;;  %v1157_v10 = vld [vmem:[%s1498_s1 + $0x188] sm:$0xff] }
  0x19   :  { %636 = vmatpush.bf16.msra.mxu3 %v1134_v27  ;;  %v1166_v7 = vld [vmem:[%s1498_s1 + $0x1d0] sm:$0xff]  ;;  %v1165_v11 = vld [vmem:[%s1498_s1 + $0x1c8] sm:$0xff]  ;;  %v1140_v12 = vld [vmem:[%s1498_s1 + $0x100] sm:$0xff] }
  0x1a   :  { %598 = vmatpush.bf16.msra.mxu0 %v1109_v30  ;;  %v1148_v13 = vld [vmem:[%s1498_s1 + $0x140] sm:$0xff]  ;;  %v57_v17 = vld.sshfl [vmem:[#allocation1 + $0x28] sm:$0xff pattern:$0x73625140]  ;;  %v1179_v24 = vld [vmem:[%s1500_s3 + $0x38] sm:$0xff] }
  0x1b   :  { %611 = vmatpush.bf16.msra.mxu1 %v1117_v31  ;;  %v1156_v14 = vld [vmem:[%s1498_s1 + $0x180] sm:$0xff]  ;;  %v58_v18 = vld.sshfl [vmem:[#allocation1 + $0x30] sm:$0xff pattern:$0x73625140]  ;;  %v73_v21 = vpack.c.bf16 %v57_v17, %v57_v17  ;;  %v1177_v26 = vld [vmem:[%s1500_s3 + $0x28] sm:$0xff] }
  0x1c   :  { %624 = vmatpush.bf16.msra.mxu2 %v1125_v32  ;;  %v1164_v15 = vld [vmem:[%s1498_s1 + $0x1c0] sm:$0xff]  ;;  %v59_v19 = vld.sshfl [vmem:[#allocation1 + $0x38] sm:$0xff pattern:$0x73625140]  ;;  %v74_v22 = vpack.c.bf16 %v58_v18, %v58_v18  ;;  %v1178_v25 = vld [vmem:[%s1500_s3 + $0x30] sm:$0xff] }
  0x1d   :  { %637 = vmatpush.bf16.msra.mxu3 %v1133_v33  ;;  %v56_v16 = vld.sshfl [vmem:[#allocation1 + $0x20] sm:$0xff pattern:$0x73625140]  ;;  %v75_v23 = vpack.c.bf16 %v59_v19, %v59_v19  ;;  %v1175_v28 = vld [vmem:[%s1500_s3 + $0x18] sm:$0xff]  ;;  %v1174_v30 = vld [vmem:[%s1500_s3 + $0x10] sm:$0xff] }
  0x1e   :  { %599 = vmatpush.bf16.msra.mxu0 %v1108_v35  ;;  %v72_v20 = vpack.c.bf16 %v56_v16, %v56_v16  ;;  %v1176_v27 = vld [vmem:[%s1500_s3 + $0x20] sm:$0xff]  ;;  %v1173_v32 = vld [vmem:[%s1500_s3 + $0x8] sm:$0xff] }
  0x1f   :  { %612 = vmatpush.bf16.msra.mxu1 %v1116_v37  ;;  %v1172_v36 = vld [vmem:[%s1500_s3] sm:$0xff] }
  0x20   :  { %625 = vmatpush.bf16.msra.mxu2 %v1124_v38  ;;  %v1183_v38 = vld [vmem:[%s1499_s2] ss:$0 sm:$0xff] }
  0x21   :  { %638 = vmatpush.bf16.msra.mxu3 %v1132_v39  ;;  %600 = vmatmul.bf16.vlgmr.msra.gmra.mxu0 %v68_v49 }
  0x22   :  { %644 = vmatpush.bf16.msrb.mxu0 %v1147_v40  ;;  %613 = vmatmul.bf16.vlgmr.msra.gmra.mxu1 %v69_v51 }
  0x23   :  { %657 = vmatpush.bf16.msrb.mxu1 %v1155_v42  ;;  %626 = vmatmul.bf16.vlgmr.msra.gmra.mxu2 %v70_v48 }
  0x24   :  { %670 = vmatpush.bf16.msrb.mxu2 %v1163_v46  ;;  %639 = vmatmul.bf16.vlgmr.msra.gmra.mxu3 %v71_v50 }
  0x25   :  { %683 = vmatpush.bf16.msrb.mxu3 %v1171_v47 }
  0x26   :  { %645 = vmatpush.bf16.msrb.mxu0 %v1146_v52 }
  0x27   :  { %658 = vmatpush.bf16.msrb.mxu1 %v1154_v53 }
  0x28   :  { %671 = vmatpush.bf16.msrb.mxu2 %v1162_v54 }
  0x29   :  { %684 = vmatpush.bf16.msrb.mxu3 %v1170_v55 }
  0x2a   :  { %646 = vmatpush.bf16.msrb.mxu0 %v1145_v56 }
  0x2b   :  { %659 = vmatpush.bf16.msrb.mxu1 %v1153_v57 }
  0x2c   :  { %672 = vmatpush.bf16.msrb.mxu2 %v1161_v58 }
  0x2d   :  { %685 = vmatpush.bf16.msrb.mxu3 %v1169_v59  ;;  %v1184_v59 = vld [vmem:[%s1501_s4] ss:$0 sm:$0xff] }
  0x2e   :  { %647 = vmatpush.bf16.msrb.mxu0 %v1144_v60 }
  0x2f   :  { %660 = vmatpush.bf16.msrb.mxu1 %v1152_v61 }
  0x30   :  { %673 = vmatpush.bf16.msrb.mxu2 %v1160_v62 }
  0x31   :  { %686 = vmatpush.bf16.msrb.mxu3 %v1168_v63 }
  0x32   :  { %648 = vmatpush.bf16.msrb.mxu0 %v1143_v0 }
  0x33   :  { %661 = vmatpush.bf16.msrb.mxu1 %v1151_v1 }
  0x34   :  { %674 = vmatpush.bf16.msrb.mxu2 %v1159_v2 }
  0x35   :  { %687 = vmatpush.bf16.msrb.mxu3 %v1167_v3 }
  0x36   :  { %649 = vmatpush.bf16.msrb.mxu0 %v1142_v4 }
  0x37   :  { %662 = vmatpush.bf16.msrb.mxu1 %v1150_v5 }
  0x38   :  { %675 = vmatpush.bf16.msrb.mxu2 %v1158_v6 }
  0x39   :  { %688 = vmatpush.bf16.msrb.mxu3 %v1166_v7 }
  0x3a   :  { %650 = vmatpush.bf16.msrb.mxu0 %v1141_v8 }
  0x3b   :  { %663 = vmatpush.bf16.msrb.mxu1 %v1149_v9 }
  0x3c   :  { %676 = vmatpush.bf16.msrb.mxu2 %v1157_v10 }
  0x3d   :  { %689 = vmatpush.bf16.msrb.mxu3 %v1165_v11 }
  0x3e   :  { %651 = vmatpush.bf16.msrb.mxu0 %v1140_v12 }
  0x3f   :  { %664 = vmatpush.bf16.msrb.mxu1 %v1148_v13 }
  0x40   :  { %677 = vmatpush.bf16.msrb.mxu2 %v1156_v14 }
  0x41   :  { %690 = vmatpush.bf16.msrb.mxu3 %v1164_v15  ;;  %652 = vmatmul.bf16.vlgmr.msrb.gmra.mxu0 %v72_v20 }
  0x42   :  { %665 = vmatmul.bf16.vlgmr.msrb.gmra.mxu1 %v73_v21  ;;  %766 = vmatpush.bf16.msra.mxu0 %v1179_v24 }
  0x43   :  { %678 = vmatmul.bf16.vlgmr.msrb.gmra.mxu2 %v74_v22 }
  0x44   :  { %691 = vmatmul.bf16.vlgmr.msrb.gmra.mxu3 %v75_v23 }
  0x46   :  { %767 = vmatpush.bf16.msra.mxu0 %v1178_v25 }
  0x4a   :  { %768 = vmatpush.bf16.msra.mxu0 %v1177_v26 }
  0x4e   :  { %769 = vmatpush.bf16.msra.mxu0 %v1176_v27 }
  0x52   :  { %770 = vmatpush.bf16.msra.mxu0 %v1175_v28 }
  0x56   :  { %771 = vmatpush.bf16.msra.mxu0 %v1174_v30 }
  0x5a   :  { %772 = vmatpush.bf16.msra.mxu0 %v1173_v32 }
  0x5e   :  { %773 = vmatpush.bf16.msra.mxu0 %v1172_v36 }
  0x9e   :  { %v601_v29 = vpop.f32.mrf.mxu0 }
  0x9f   :  { %v614_v31 = vpop.f32.mrf.mxu1  ;;  %v602_v41 = vadd.f32 %v1183_v38, %v601_v29 }
  0xa1   :  { %v615_v42 = vadd.f32 %v614_v31, %v602_v41 }
  0xa6   :  { %v627_v33 = vpop.f32.mrf.mxu2  ;;  %v603_v35 = vpop.f32.mrf.mxu0 }
  0xa7   :  { %v640_v34 = vpop.f32.mrf.mxu3  ;;  %v616_v37 = vpop.f32.mrf.mxu1  ;;  %v628_v43 = vadd.f32 %v627_v33, %v615_v42 }
  0xa9   :  { %v641_v44 = vadd.f32 %v640_v34, %v628_v43 }
  0xae   :  { %v629_v39 = vpop.f32.mrf.mxu2 }
  0xaf   :  { %v642_v40 = vpop.f32.mrf.mxu3 }
  0xbe   :  { %v653_v45 = vpop.f32.mrf.mxu0 }
  0xbf   :  { %v666_v46 = vpop.f32.mrf.mxu1  ;;  %v654_v47 = vadd.f32 %v653_v45, %v641_v44 }
  0xc1   :  { %v667_v48 = vadd.f32 %v666_v46, %v654_v47 }
  0xc6   :  { %v679_v49 = vpop.f32.mrf.mxu2  ;;  %v655_v52 = vpop.f32.mrf.mxu0 }
  0xc7   :  { %v692_v50 = vpop.f32.mrf.mxu3  ;;  %v680_v51 = vadd.f32 %v679_v49, %v667_v48  ;;  %v668_v53 = vpop.f32.mrf.mxu1 }
  0xc9   :  { %v693_v54 = vadd.f32 %v692_v50, %v680_v51 }
  0xcb   :  { %v696_v55 = vmax.f32 %v693_v54, 0.0 }
  0xcd   :  { %v697_v56 = vpack.c.bf16 %v696_v55, %v696_v55 }
  0xce   :  { %v681_v57 = vpop.f32.mrf.mxu2 }
  0xcf   :  { %v694_v58 = vpop.f32.mrf.mxu3  ;;  %774 = vmatmul.bf16.vlgmr.msra.gmra.mxu0 %v697_v56 }
 0x14c   :  { %v775_v60 = vpop.f32.mrf.mxu0 }
 0x14d   :  { %v776_v61 = vadd.f32 %v1184_v59, %v775_v60 }
 0x14f   :  { %779 = vmax.xlane.f32.xlu0 %v776_v61 }
 0x154   :  { %v777_v62 = vpop.f32.mrf.mxu0 }
 0x1c2   :  { %v780_v63 = vpop.xlane.xlu0 %779 }
 0x1c3   :  { %v781_v0 = vsub.f32 %v776_v61, %v780_v63 }
 0x1c5   :  { %v782_v1 = vmul.f32 1.442695, %v781_v0 }
 0x1c7   :  { %1185 = vpow2.f32 %v782_v1 }
 0x1cd   :  { %v1186_v2 = vpop.eup %1185 }
 0x1ce   :  { %784 = vadd.xlane.f32.xlu0 %v1186_v2 }
 0x241   :  { %v785_v3 = vpop.xlane.xlu0 %784 }
 0x242   :  { %1187 = vrcp.f32 %v785_v3  ;;  %v797_v7 = vand.u32 2147483648, %v785_v3  ;;  %v795_v9 = vand.u32 2147483647, %v785_v3  ;;  %vm791_vm1 = vweird.f32 %v785_v3 }
 0x244   :  { %v798_v11 = vor.u32 1.1754944e-38, %v797_v7  ;;  %vm796_vm3 = vcmp.eq.f32.partialorder %v795_v9, 8.507059e+37 }
 0x248   :  { %v1188_v4 = vpop.eup %1187 }
 0x249   :  { %v787_v5 = vmul.f32 %v1188_v4, %v785_v3  ;;  %vm792_vm0 = vweird.f32 %v1188_v4 }
 0x24a   :  { %vm793_vm2 = vmor %vm791_vm1, %vm792_vm0 }
 0x24b   :  { %v788_v6 = vsub.f32 1.0, %v787_v5 }
 0x24d   :  { %v789_v8 = vmul.f32 %v1188_v4, %v788_v6 }
 0x24f   :  { %v790_v10 = vadd.f32 %v1188_v4, %v789_v8 }
 0x251   :  { %v794_v12 = vsel %vm793_vm2, %v1188_v4, %v790_v10 }
 0x252   :  { %v799_v13 = vsel %vm796_vm3, %v798_v11, %v794_v12 }
 0x253   :  { %v800_v14 = vmul.f32 %v1186_v2, %v799_v13 }
 0x255   :  { %801 = vst [vmem:[#allocation2] sm:$0xff] %v800_v14 }
 0x256   :  { %805 = vsyncadd [#allocation3], 96  ;;  %s808_s26 = sshll.u32 %s1502_s5, 4  ;;  %s1215_s27 = smov [#allocation2]   ;;  %s809_s26 = int_to_ptr.hbm [resolvable:$true] %s808_s26 }
 0x257   :  { %s806_s28 = sshll.u32 %s1215_s27, 4  ;;  %s1216_s29 = smov 32   ;;  %s807_s28 = int_to_ptr.vmem [resolvable:$true] %s806_s28 }
 0x258   :  { %s1217_s30 = smov 2  }
 0x259   :  { %814 = dma.vmem_to_hbm [thread:$0]  %s807_s28, 32, %s809_s26, [#allocation3], %s1216_s29, %s1216_s29, %s1217_s30  }
 0x25a   :  { %1213 = dma.done.wait [#allocation3], 128  }
 0x25b   :  { %1214 = vsyncadd [#allocation3], 4294967168 }
 0x25c   :  { %819 = vsyncpa [#allocation3], 1 }

</bundles_post_ra>
